<compile_context>
chip_gen: v6e
topology: v6e:2x2x1
jax: 0.10.0
libtpu: 0.0.40
codegen_flags: <defaults>
</compile_context>

<pallas_src>
import functools
import math

import jax
import jax.numpy as jnp
import numpy as np
from jax.experimental import pallas as pl
from jax.experimental.pallas import tpu as pltpu

LANES = 512               # lane-dense last dim (multiple of 128 -> unmasked vst)
DEFAULT_TILE_ROWS = 1024  # (1024, 512) f32 tile = 2 MiB; 4x with double-buffering


def _iq_clamp_kernel(x_ref, o_ref, *, scale, inv_scale, q_lo, q_hi):
    """Elementwise luna_quant quantize -> clamp -> dequant on a (block_r, LANES) tile."""
    x = x_ref[...].astype(jnp.float32)
    # NOTE: mul and (+0.5) kept as separate statements; an FMA fusion could flip
    # exact .5-tie inputs by one quantization LSB vs torch's double rounding.
    t = x * scale
    q = jnp.floor(t + 0.5)              # round-half-up, matches (x*s + 0.5).floor()
    q = jnp.clip(q, q_lo, q_hi)         # [0,127] when min==0, else [-128,127]
    o_ref[...] = (q * inv_scale).astype(o_ref.dtype)  # exact: scale is a power of 2


def iq_clamp_layer(x, min_val, max_val, local_scale_o, running_o=0.0,
                   training=True, *, tile_rows=DEFAULT_TILE_ROWS, lanes=LANES):
    """Forward of iqClampLayer (luna_quant). Returns (y, scale_o, new_running_o)."""
    # --- luna_quant validity checks (compile-time Python scalars) ---
    qx = math.log2(127.0 / max_val)
    if not float(qx).is_integer():
        raise ValueError(
            "luna_quant max value %r not supported, must be 127/2^n" % (max_val,))
    scale = 2.0 ** qx
    if not (min_val == 0 or abs(min_val + 128.0 / scale) < 1e-9):
        raise ValueError(
            "luna_quant min value %r not supported, must be -128/2^n or 0" % (min_val,))

    # --- buffer updates (traced jnp ops -> no host sync, jit-friendly) ---
    momentum = 0.1
    running_o = jnp.asarray(running_o, jnp.float32)
    local_scale_o = jnp.asarray(local_scale_o, jnp.float32)
    if training:
        new_running_o = (1.0 - momentum) * running_o + momentum * (127.0 / local_scale_o)
    else:
        new_running_o = running_o
    scale_o = jnp.float32(scale)  # luna branch always overwrites the QValue scale

    # --- native-dtype, lane-dense 2D layout over the aligned prefix ---
    x = jnp.asarray(x)
    if not jnp.issubdtype(x.dtype, jnp.floating):
        x = x.astype(jnp.float32)
    out_dtype = x.dtype
    orig_shape = x.shape
    total = x.size
    if total == 0:
        return jnp.zeros(orig_shape, out_dtype), scale_o, new_running_o
    flat = x.reshape(-1)

    q_lo = 0.0 if min_val == 0 else -128.0
    q_hi = 127.0
    kernel = functools.partial(
        _iq_clamp_kernel,
        scale=float(scale), inv_scale=float(1.0 / scale), q_lo=q_lo, q_hi=q_hi)

    aligned = (total // lanes) * lanes
    rows = aligned // lanes
    tail = total - aligned

    pieces = []
    if rows > 0:
        src = flat if tail == 0 else flat[:aligned]
        x2d = src.reshape(rows, lanes)              # zero-copy bitcast

        itemsize = jnp.dtype(out_dtype).itemsize
        sub = max(8, 32 // itemsize)                # sublane packing: 8 f32, 16 bf16
        if rows <= sub:
            block_r = rows                          # block == full dim is always legal
        else:
            # target >= ~8 balanced grid steps for megacore + per-core pipelining
            target = -(-rows // 8)                  # cdiv(rows, 8)
            target = ((target + sub - 1) // sub) * sub
            block_r = min(tile_rows, max(sub, target))
        grid_n = pl.cdiv(rows, block_r)

        out2d = pl.pallas_call(
            kernel,
            out_shape=jax.ShapeDtypeStruct((rows, lanes), out_dtype),
            grid=(grid_n,),
            in_specs=[pl.BlockSpec((block_r, lanes), lambda i: (i, 0))],
            out_specs=pl.BlockSpec((block_r, lanes), lambda i: (i, 0)),
            compiler_params=pltpu.CompilerParams(
                dimension_semantics=("parallel",)),
            cost_estimate=pl.CostEstimate(
                flops=5 * rows * lanes, transcendentals=0,
                bytes_accessed=2 * itemsize * rows * lanes),
        )(x2d)
        pieces.append(out2d.reshape(-1))

    if tail:
        # <512 trailing elements: plain jnp ops (negligible), instead of padding
        # the whole tensor and slicing it back (two extra full HBM passes).
        t = flat[aligned:].astype(jnp.float32)
        qv = jnp.clip(jnp.floor(t * scale + 0.5), q_lo, q_hi)
        pieces.append((qv * (1.0 / scale)).astype(out_dtype))

    out = pieces[0] if len(pieces) == 1 else jnp.concatenate(pieces)
    out = out.reshape(orig_shape)
    return out, scale_o, new_running_o


if __name__ == "__main__":
    key = jax.random.PRNGKey(0)
    # small NCHW-like input, values wide enough that clamping actually triggers
    x = 4.0 * jax.random.normal(key, (2, 4, 16, 16), dtype=jnp.float32)

    # typical luna_quant clamp config: 127/max = 16 = 2^4, min = -128/16 = -8
    min_val, max_val = -8.0, 7.9375
    local_scale_o = 16.0
    running_o0 = 0.0
    s = 16.0

    # --- f32, min != 0 path ---
    out, scale_o, running_o = iq_clamp_layer(
        x, min_val, max_val, local_scale_o, running_o=running_o0, training=True)
    out = jax.block_until_ready(out)

    xn = np.asarray(x, np.float32)
    q_ref = np.clip(np.floor(xn * s + 0.5), -128.0, 127.0)
    ref = (q_ref / s).astype(np.float32)

    o = np.asarray(out)
    assert o.shape == x.shape and o.dtype == np.float32
    # allow at most one quantization LSB of slack (FMA-vs-separate rounding at ties)
    assert np.max(np.abs(o - ref)) <= (1.0 / s) + 1e-6
    assert np.mean(o == ref) > 0.99
    assert o.min() >= -128.0 / s - 1e-6 and o.max() <= 127.0 / s + 1e-6
    assert float(scale_o) == s
    assert abs(float(running_o) - (0.9 * running_o0 + 0.1 * (127.0 / local_scale_o))) < 1e-6

    # --- min == 0 path (outputs clamped to [0, 127]/scale) ---
    out0, scale_o0, _ = iq_clamp_layer(
        x, 0.0, 7.9375, local_scale_o, running_o=running_o0, training=True)
    out0 = jax.block_until_ready(out0)
    o0 = np.asarray(out0)
    ref0 = (np.clip(np.floor(xn * s + 0.5), 0.0, 127.0) / s).astype(np.float32)
    assert np.max(np.abs(o0 - ref0)) <= (1.0 / s) + 1e-6
    assert o0.min() >= 0.0 and float(scale_o0) == s

    # --- bf16 native-dtype path (no wrapper f32 copy; output stays bf16) ---
    xb = x.astype(jnp.bfloat16)
    outb, _, _ = iq_clamp_layer(
        xb, min_val, max_val, local_scale_o, running_o=running_o0, training=True)
    outb = jax.block_until_ready(outb)
    assert outb.dtype == jnp.bfloat16
    xbn = np.asarray(xb).astype(np.float32)
    refb = (np.clip(np.floor(xbn * s + 0.5), -128.0, 127.0) / s).astype(np.float32)
    ob = np.asarray(outb).astype(np.float32)
    assert np.max(np.abs(ob - refb)) <= (1.0 / s) + 1e-6

    # --- ragged path (aligned prefix via kernel + jnp tail, no pad/slice) ---
    xr = 4.0 * jax.random.normal(jax.random.PRNGKey(1), (3, 250), dtype=jnp.float32)
    outr, _, _ = iq_clamp_layer(
        xr, min_val, max_val, local_scale_o, running_o=running_o0, training=True)
    outr = jax.block_until_ready(outr)
    xrn = np.asarray(xr, np.float32)
    refr = (np.clip(np.floor(xrn * s + 0.5), -128.0, 127.0) / s).astype(np.float32)
    orr = np.asarray(outr)
    assert orr.shape == xr.shape
    assert np.max(np.abs(orr - refr)) <= (1.0 / s) + 1e-6

    print("KERNEL_OK")
</pallas_src>

<mosaic_0001>
module attributes {stable_mosaic.version = 11 : i64} {
  func.func @_iq_clamp_kernel(%arg0: i32, %arg1: memref<4x512xf32, #tpu.memory_space<vmem>>, %arg2: memref<4x512xf32, #tpu.memory_space<vmem>>) attributes {dimension_semantics = [#tpu.dimension_semantics<parallel>], iteration_bounds = array<i64: 1>, scalar_prefetch = 0 : i64, scratch_operands = 0 : i64, tpu.core_type = #tpu.core_type<tc>, window_params = [{transform_indices = @transform_0, window_bounds = array<i64: 4, 512>}, {transform_indices = @transform_1, window_bounds = array<i64: 4, 512>}]} {
    %c0 = arith.constant 0 : index
    %c0_0 = arith.constant 0 : index
    %0 = vector.load %arg1[%c0, %c0_0] : memref<4x512xf32, #tpu.memory_space<vmem>>, vector<4x512xf32>
    %cst = arith.constant 1.600000e+01 : f32
    %1 = vector.broadcast %cst : f32 to vector<4x512xf32>
    %2 = arith.mulf %0, %1 : vector<4x512xf32>
    %cst_1 = arith.constant 5.000000e-01 : f32
    %3 = vector.broadcast %cst_1 : f32 to vector<4x512xf32>
    %4 = arith.addf %2, %3 : vector<4x512xf32>
    %5 = math.floor %4 : vector<4x512xf32>
    %cst_2 = arith.constant -1.280000e+02 : f32
    %cst_3 = arith.constant 1.270000e+02 : f32
    %6 = vector.broadcast %cst_2 : f32 to vector<4x512xf32>
    %7 = arith.maximumf %6, %5 : vector<4x512xf32>
    %8 = vector.broadcast %cst_3 : f32 to vector<4x512xf32>
    %9 = arith.minimumf %8, %7 : vector<4x512xf32>
    %cst_4 = arith.constant 6.250000e-02 : f32
    %10 = vector.broadcast %cst_4 : f32 to vector<4x512xf32>
    %11 = arith.mulf %9, %10 : vector<4x512xf32>
    %c0_5 = arith.constant 0 : index
    %c0_6 = arith.constant 0 : index
    %12 = vector.load %arg2[%c0_5, %c0_6] : memref<4x512xf32, #tpu.memory_space<vmem>>, vector<4x512xf32>
    tpu.vector_store %arg2[%c0_5, %c0_6], %11 {strides = array<i32>} : memref<4x512xf32, #tpu.memory_space<vmem>>, vector<4x512xf32>,
    return
  }
  func.func @transform_0(%arg0: i32) -> (i32, i32) {
    %c0_i32 = arith.constant 0 : i32
    %c0_i32_0 = arith.constant 0 : i32
    return %arg0, %c0_i32 : i32, i32
  }
  func.func @transform_1(%arg0: i32) -> (i32, i32) {
    %c0_i32 = arith.constant 0 : i32
    %c0_i32_0 = arith.constant 0 : i32
    return %arg0, %c0_i32 : i32, i32
  }
}

</mosaic_0001>

<bundles_post_ra>
// kernel: tpu_custom_call.1
= control target key start
LH: loop header
LB: loop body
LE: loop exit
PB: predicated region body
PF: predicated region fallthrough
CT: control target
= control target key end

     0   :  { %6 = vsyncpa [#allocation3], 0  ;;  %s116_s0 = inlined_call_operand.hbm [shape: f32[4,512], index: 0, kind: input, shape index: {}]   ;;  %s117_s1 = inlined_call_operand.hbm [shape: f32[4,512], index: 1, kind: output, shape index: {}]  }
   0x1   :  { %7 = vsyncpa [#allocation4], 0  ;;  %s98_s6 = smov [#allocation2]  }
   0x2   :  { %s14_s7 = sshll.u32 %s98_s6, 4  ;;  %s15_s7 = int_to_ptr.vmem [resolvable:$true] %s14_s7 }
   0x3   :  { %s62_s8 = scalar_lea.vmem %s15_s7, 256  ;;  %p67_p1 = scmp.lt.s32.totalorder %s15_s7, %s15_s7 }
   0x4   :  { %p63_p0 = scmp.ne.s32.totalorder %s15_s7, %s62_s8  ;;  %p68_p2 = scmp.lt.s32.totalorder %s62_s8, %s62_s8 }
   0x6   :  { %p69_p3 = por %p68_p2, %p67_p1 }
   0x8   :  { %p70_p4 = pnand %p69_p3, %p63_p0 }
   0xa   :  { %73 = shalt.err (!%p70_p4)
}
   0xb   :  { %17 = dma.hbm_to_vmem [thread:$0]  %s116_s0, 256, %s15_s7, [#allocation3]  }
   0xc   :  { %94 = dma.done.wait [#allocation3], 256  }
   0xd   :  { %95 = vsyncadd [#allocation3], 4294967040  ;;  %v21_v0 = vld [vmem:[#allocation2] sm:$0xff]  ;;  %v22_v1 = vld [vmem:[#allocation2 + $0x8] sm:$0xff]  ;;  %s99_s11 = smov [#allocation5]  }
   0xe   :  { %v23_v2 = vmul.f32 16.0, %v21_v0  ;;  %v24_v3 = vmul.f32 16.0, %v22_v1  ;;  %s43_s12 = sshll.u32 %s99_s11, 4  ;;  %s44_s12 = int_to_ptr.vmem [resolvable:$true] %s43_s12 }
   0xf   :  { %s74_s0 = scalar_lea.vmem %s44_s12, 256  ;;  %p79_p6 = scmp.lt.s32.totalorder %s44_s12, %s44_s12 }
  0x10   :  { %v25_v4 = vadd.f32 0.5, %v23_v2  ;;  %v26_v5 = vadd.f32 0.5, %v24_v3  ;;  %p75_p5 = scmp.ne.s32.totalorder %s44_s12, %s74_s0  ;;  %p80_p7 = scmp.lt.s32.totalorder %s74_s0, %s74_s0 }
  0x12   :  { %v27_v6 = vfloor.f32 %v25_v4  ;;  %v28_v7 = vfloor.f32 %v26_v5  ;;  %p81_p8 = por %p80_p7, %p79_p6 }
  0x14   :  { %v29_v8 = vmax.f32 %v27_v6, -128.0  ;;  %v30_v9 = vmax.f32 %v28_v7, -128.0  ;;  %p82_p9 = pnand %p81_p8, %p75_p5 }
  0x16   :  { %v31_v10 = vmin.f32 %v29_v8, 127.0  ;;  %v32_v11 = vmin.f32 %v30_v9, 127.0 }
  0x18   :  { %v33_v12 = vmul.f32 0.0625, %v31_v10  ;;  %v34_v13 = vmul.f32 0.0625, %v32_v11 }
  0x1a   :  { %35 = vst [vmem:[#allocation5] sm:$0xff] %v33_v12  ;;  %36 = vst [vmem:[#allocation5 + $0x8] sm:$0xff] %v34_v13 }
  0x1b   :  { %85 = shalt.err (!%p82_p9)
}
  0x1c   :  { %46 = dma.vmem_to_hbm [thread:$0]  %s44_s12, 256, %s117_s1, [#allocation4]  }
  0x1d   :  { %96 = dma.done.wait [#allocation4], 256  }
  0x1e   :  { %97 = vsyncadd [#allocation4], 4294967040 }
  0x1f   :  { %50 = vsyncpa [#allocation3], 1 }
  0x20   :  { %51 = vsyncpa [#allocation4], 1 }

</bundles_post_ra>
